<compile_context>
chip_gen: v6e
topology: v6e:2x2x1
jax: 0.10.0
libtpu: 0.0.40
codegen_flags: <defaults>
</compile_context>

<pallas_src>
import functools
import math

import jax
import jax.numpy as jnp
from jax import lax
from jax.experimental import pallas as pl
from jax.experimental.pallas import tpu as pltpu

LN_EPS = 1e-5                    # nn.LayerNorm default eps
LOG_EPS = 1e-8                   # the 1e-08 used throughout MinLSTM
_LOG_OF_EPS = math.log(LOG_EPS)  # log(0 + 1e-8), compile-time constant
_INV_SQRT2 = 0.7071067811865475

# MXU-native operand dtype for all GEMMs (f32 accumulation).  Set to
# jnp.float32 for bit-closer-to-torch numerics at a large MXU throughput cost.
GEMM_DTYPE = jnp.bfloat16

VMEM_LIMIT = 32 * 1024 * 1024    # explicit scoped-VMEM budget (safe on v5e/v6e/v7x)


# --------------------------------------------------------------------------
# in-kernel math helpers (built only from ops guaranteed to lower on Mosaic)
# --------------------------------------------------------------------------
def _layer_norm(x, gamma, beta):
    mu = jnp.mean(x, axis=-1, keepdims=True)
    var = jnp.mean((x - mu) ** 2, axis=-1, keepdims=True)
    return (x - mu) * lax.rsqrt(var + LN_EPS) * gamma + beta


def _sigmoid(x):
    # 1 / (1 + exp(-x)); the divide goes to the EUP approx reciprocal slot.
    return pl.reciprocal(1.0 + jnp.exp(-x), approx=True)


def _logsumexp2(a, b):
    # max + log(1 + exp(-|a-b|)): one exp + one log (vs 2 exp + 1 log before).
    m = jnp.maximum(a, b)
    return m + jnp.log(1.0 + jnp.exp(-jnp.abs(a - b)))


def _erf(x):
    # Eigen/XLA float32 rational erf approximation (what XLA uses for erf_f32).
    x = jnp.clip(x, -4.0, 4.0)
    x2 = x * x
    p = x2 * -2.72614225801306e-10 + 2.77068142495902e-08
    p = x2 * p + -2.10102402082508e-06
    p = x2 * p + -5.69250639462346e-05
    p = x2 * p + -7.34990630326855e-04
    p = x2 * p + -2.95459980854025e-03
    p = x2 * p + -1.60960333262415e-02
    q = x2 * -1.45660718464996e-05 + -2.13374055278905e-04
    q = x2 * q + -1.68282697438203e-03
    q = x2 * q + -7.37332916720468e-03
    q = x2 * q + -1.42647390514189e-02
    return x * p / q


def _gelu_exact(x):
    # matches torch.nn.GELU() (exact erf form)
    return 0.5 * x * (1.0 + _erf(x * _INV_SQRT2))


def _mxu_dot(a, b):
    # bf16 operands, f32 accumulation (MXU-native on every TPU generation).
    return jnp.dot(a.astype(GEMM_DTYPE), b.astype(GEMM_DTYPE),
                   preferred_element_type=jnp.float32)


def _inclusive_cumsum_seq(x, buf_ref):
    """Hillis-Steele inclusive prefix sum of x (S_tile, Hi) along axis 0.

    O(S*Hi*log2 S) adds; no SxS mask, no MXU.  The shift is staged through a
    VMEM scratch buffer using only static ref slice stores/loads (direction-
    unambiguous and guaranteed to lower on Mosaic).
    """
    s, h = x.shape
    shift = 1
    while shift < s:
        buf_ref[pl.ds(0, shift), :] = jnp.zeros((shift, h), jnp.float32)
        buf_ref[pl.ds(shift, s - shift), :] = x[0:s - shift, :]
        x = x + buf_ref[...]
        shift *= 2
    return x


# --------------------------------------------------------------------------
# fused per-layer kernel: LN -> minLSTM -> +res -> LN -> FF -> +res
# grid = (batch, seq_tiles); seq axis is 'arbitrary' (carried cumsum scratch)
# --------------------------------------------------------------------------
def _layer_kernel(x_ref, ln1g_ref, ln1b_ref, wgh_ref, wout_ref,
                  ln2g_ref, ln2b_ref, w1_ref, b1_ref, w2_ref, b2_ref,
                  o_ref, carry_ref, shift_ref, *, hidden_inner):
    s_idx = pl.program_id(1)
    x = x_ref[0]                                     # (TS, H) pre-norm residual
    ts = x.shape[0]
    hi = hidden_inner

    # ---------------- minLSTM half ----------------
    xn = _layer_norm(x, ln1g_ref[...], ln1b_ref[...])
    gh = _mxu_dot(xn, wgh_ref[...])                  # (TS, 3*Hi), f32 acc

    f_gate = _sigmoid(gh[:, 0:hi])
    i_gate = _sigmoid(gh[:, hi:2 * hi])
    tilde_h = gh[:, 2 * hi:3 * hi]

    # seq_len > 1 branch of MinLSTM.forward (prev_hidden = prev_cell = zeros)
    log_f = jnp.log(f_gate + LOG_EPS)
    log_i = jnp.log(i_gate + LOG_EPS)
    lse_fi = _logsumexp2(log_f, log_i)
    log_f_prime = lse_fi - log_f
    log_i_prime = lse_fi - log_i

    term_a = log_f_prime + _LOG_OF_EPS               # log(prev_cell + 1e-8) = log(1e-8)
    term_b = log_i_prime + jnp.log(tilde_h + LOG_EPS)  # NaN for tilde_h<=-1e-8,
    log_state = _logsumexp2(term_a, term_b)            # exactly as in torch

    # running cumsum of log_f_prime across sequence tiles (carried scratch)
    @pl.when(s_idx == 0)
    def _init_carry():
        carry_ref[...] = jnp.zeros_like(carry_ref)

    local_cum = _inclusive_cumsum_seq(log_f_prime, shift_ref)   # (TS, Hi)
    total_cum = local_cum + carry_ref[...]                      # + (1, Hi) carry
    carry_ref[...] = total_cum[ts - 1:ts, :]                    # carry for next tile

    next_cell = jnp.exp(total_cum + log_state)                  # (TS, Hi)

    # to_out projection (expansion_factor != 1.0) then residual add
    mid = _mxu_dot(next_cell, wout_ref[...]) + x                # (TS, H)

    # ---------------- feed-forward half ----------------
    yn = _layer_norm(mid, ln2g_ref[...], ln2b_ref[...])
    h1 = _mxu_dot(yn, w1_ref[...]) + b1_ref[...]
    h1 = _gelu_exact(h1)
    y = _mxu_dot(h1, w2_ref[...]) + b2_ref[...]

    o_ref[0] = (y + mid).astype(o_ref.dtype)


def minlstm_layer(x, lyr, *, seq_tile=256):
    B, S, H = x.shape
    Hi = lyr["wout_t"].shape[0]
    F = lyr["w1_t"].shape[1]
    ts = min(seq_tile, S)
    kernel = functools.partial(_layer_kernel, hidden_inner=Hi)
    const = lambda b, s: (0, 0)          # weights / LN params: fixed block, no re-DMA
    return pl.pallas_call(
        kernel,
        out_shape=jax.ShapeDtypeStruct((B, S, H), x.dtype),
        grid=(B, pl.cdiv(S, ts)),
        in_specs=[
            pl.BlockSpec((1, ts, H), lambda b, s: (b, s, 0)),
            pl.BlockSpec((1, H), const),           # ln1 gamma
            pl.BlockSpec((1, H), const),           # ln1 beta
            pl.BlockSpec((H, 3 * Hi), const),      # to_gates_and_hidden (bf16)
            pl.BlockSpec((Hi, H), const),          # to_out (bf16)
            pl.BlockSpec((1, H), const),           # ln2 gamma
            pl.BlockSpec((1, H), const),           # ln2 beta
            pl.BlockSpec((H, F), const),           # ff w1 (bf16)
            pl.BlockSpec((1, F), const),           # ff b1
            pl.BlockSpec((F, H), const),           # ff w2 (bf16)
            pl.BlockSpec((1, H), const),           # ff b2
        ],
        out_specs=pl.BlockSpec((1, ts, H), lambda b, s: (b, s, 0)),
        scratch_shapes=[
            pltpu.VMEM((1, Hi), jnp.float32),      # carried cumsum of log f'
            pltpu.VMEM((ts, Hi), jnp.float32),     # shift staging buffer
        ],
        compiler_params=pltpu.CompilerParams(
            dimension_semantics=("parallel", "arbitrary"),
            vmem_limit_bytes=VMEM_LIMIT),
    )(x,
      lyr["ln1_g"], lyr["ln1_b"],
      lyr["wgh_t"].astype(GEMM_DTYPE), lyr["wout_t"].astype(GEMM_DTYPE),
      lyr["ln2_g"], lyr["ln2_b"],
      lyr["w1_t"].astype(GEMM_DTYPE), lyr["b1"],
      lyr["w2_t"].astype(GEMM_DTYPE), lyr["b2"])


# --------------------------------------------------------------------------
# LM head: final LayerNorm + logits GEMM, tiled over (token rows, vocab)
# --------------------------------------------------------------------------
def _head_kernel(x_ref, g_ref, b_ref, wl_ref, o_ref):
    xn = _layer_norm(x_ref[...], g_ref[...], b_ref[...])
    o_ref[...] = jnp.dot(xn.astype(GEMM_DTYPE), wl_ref[...],
                         preferred_element_type=jnp.float32).astype(o_ref.dtype)


def lm_head(x, gamma, beta, wlogits_t, *, row_tile=256, vocab_tile=512):
    B, S, H = x.shape
    V = wlogits_t.shape[1]
    M = B * S
    tm = min(row_tile, M)
    tv = min(vocab_tile, V)
    x2 = x.reshape(M, H)
    out2 = pl.pallas_call(
        _head_kernel,
        out_shape=jax.ShapeDtypeStruct((M, V), x.dtype),
        grid=(pl.cdiv(M, tm), pl.cdiv(V, tv)),
        in_specs=[
            pl.BlockSpec((tm, H), lambda m, v: (m, 0)),
            pl.BlockSpec((1, H), lambda m, v: (0, 0)),
            pl.BlockSpec((1, H), lambda m, v: (0, 0)),
            pl.BlockSpec((H, tv), lambda m, v: (0, v)),
        ],
        out_specs=pl.BlockSpec((tm, tv), lambda m, v: (m, v)),
        compiler_params=pltpu.CompilerParams(
            dimension_semantics=("parallel", "parallel"),
            vmem_limit_bytes=VMEM_LIMIT),
    )(x2, gamma, beta, wlogits_t.astype(GEMM_DTYPE))
    return out2.reshape(B, S, V)


# --------------------------------------------------------------------------
# parameters (deterministic synthetic init; shapes follow the nn.Module)
# --------------------------------------------------------------------------
def _linear_t(key, fan_in, fan_out):
    bound = 1.0 / jnp.sqrt(jnp.float32(fan_in))
    # stored pre-transposed: (in_features, out_features)
    return jax.random.uniform(key, (fan_in, fan_out), jnp.float32, -bound, bound)


def _bias(key, fan_in, fan_out):
    bound = 1.0 / jnp.sqrt(jnp.float32(fan_in))
    return jax.random.uniform(key, (1, fan_out), jnp.float32, -bound, bound)


def init_params(key, cfg):
    V, H = cfg["vocab_size"], cfg["hidden_size"]
    Hi = int(H * cfg["min_lstm_expansion"])
    F = int(H * cfg["ff_mult"])
    n_layers = cfg["num_hidden_layers"]

    keys = jax.random.split(key, 2 + 6 * n_layers)
    params = {
        "token_emb": jax.random.normal(keys[0], (V, H), jnp.float32),
        "lnf_g": jnp.ones((1, H), jnp.float32),
        "lnf_b": jnp.zeros((1, H), jnp.float32),
        "wlogits_t": _linear_t(keys[1], H, V),
        "layers": [],
    }
    for l in range(n_layers):
        k = keys[2 + 6 * l: 2 + 6 * (l + 1)]
        params["layers"].append({
            "ln1_g": jnp.ones((1, H), jnp.float32),
            "ln1_b": jnp.zeros((1, H), jnp.float32),
            "wgh_t": _linear_t(k[0], H, 3 * Hi),   # to_gates_and_hidden (no bias)
            "wout_t": _linear_t(k[1], Hi, H),      # to_out (no bias)
            "ln2_g": jnp.ones((1, H), jnp.float32),
            "ln2_b": jnp.zeros((1, H), jnp.float32),
            "w1_t": _linear_t(k[2], H, F),
            "b1": _bias(k[3], H, F),
            "w2_t": _linear_t(k[4], F, H),
            "b2": _bias(k[5], F, H),
        })
    return params


# --------------------------------------------------------------------------
# full forward (token embedding gather is plain-JAX glue)
# --------------------------------------------------------------------------
def minlstm_lm_forward(params, token_ids):
    x = jnp.take(params["token_emb"], token_ids, axis=0)     # (B, S, H)
    for lyr in params["layers"]:
        # TODO(synk): Conv1d branch skipped (enable_conv=False in config).
        x = minlstm_layer(x, lyr)
    return lm_head(x, params["lnf_g"], params["lnf_b"], params["wlogits_t"])


if __name__ == "__main__":
    cfg = dict(
        vocab_size=64,
        hidden_size=32,
        num_hidden_layers=2,
        ff_mult=4.0,
        min_lstm_expansion=1.5,
        enable_conv=False,
        conv_kernel_size=3,
    )
    B, S = 2, 8

    key = jax.random.PRNGKey(0)
    pkey, dkey = jax.random.split(key)
    params = init_params(pkey, cfg)
    token_ids = jax.random.randint(dkey, (B, S), 0, cfg["vocab_size"])

    logits = jax.jit(minlstm_lm_forward)(params, token_ids)
    jax.block_until_ready(logits)
    assert logits.shape == (B, S, cfg["vocab_size"])
    assert logits.dtype == jnp.float32
    print("KERNEL_OK")
</pallas_src>

<mosaic_0001>
module attributes {stable_mosaic.version = 11 : i64} {
  func.func @_head_kernel(%arg0: i32, %arg1: i32, %arg2: memref<16x32xf32, #tpu.memory_space<vmem>>, %arg3: memref<1x32xf32, #tpu.memory_space<vmem>>, %arg4: memref<1x32xf32, #tpu.memory_space<vmem>>, %arg5: memref<32x64xbf16, #tpu.memory_space<vmem>>, %arg6: memref<16x64xf32, #tpu.memory_space<vmem>>) attributes {dimension_semantics = [#tpu.dimension_semantics<parallel>, #tpu.dimension_semantics<parallel>], iteration_bounds = array<i64: 1, 1>, scalar_prefetch = 0 : i64, scratch_operands = 0 : i64, tpu.core_type = #tpu.core_type<tc>, window_params = [{transform_indices = @transform_0, window_bounds = array<i64: 16, 32>}, {pipeline_mode = #tpu.pipeline_mode<synchronous>, transform_indices = @transform_1, window_bounds = array<i64: 1, 32>}, {pipeline_mode = #tpu.pipeline_mode<synchronous>, transform_indices = @transform_2, window_bounds = array<i64: 1, 32>}, {transform_indices = @transform_3, window_bounds = array<i64: 32, 64>}, {transform_indices = @transform_4, window_bounds = array<i64: 16, 64>}]} {
    %c0 = arith.constant 0 : index
    %c0_0 = arith.constant 0 : index
    %0 = vector.load %arg2[%c0, %c0_0] : memref<16x32xf32, #tpu.memory_space<vmem>>, vector<16x32xf32>
    %c0_1 = arith.constant 0 : index
    %c0_2 = arith.constant 0 : index
    %1 = vector.load %arg3[%c0_1, %c0_2] : memref<1x32xf32, #tpu.memory_space<vmem>>, vector<1x32xf32>
    %c0_3 = arith.constant 0 : index
    %c0_4 = arith.constant 0 : index
    %2 = vector.load %arg4[%c0_3, %c0_4] : memref<1x32xf32, #tpu.memory_space<vmem>>, vector<1x32xf32>
    %cst = arith.constant dense<0.000000e+00> : vector<16xf32>
    %3 = vector.multi_reduction <add>, %0, %cst [1] : vector<16x32xf32> to vector<16xf32>
    %4 = vector.shape_cast %3 : vector<16xf32> to vector<16x1xf32>
    %cst_5 = arith.constant 3.200000e+01 : f32
    %5 = vector.broadcast %cst_5 : f32 to vector<16x1xf32>
    %6 = arith.divf %4, %5 : vector<16x1xf32>
    %7 = vector.broadcast %6 : vector<16x1xf32> to vector<16x32xf32>
    %8 = arith.subf %0, %7 : vector<16x32xf32>
    %9 = arith.mulf %8, %8 : vector<16x32xf32>
    %cst_6 = arith.constant dense<0.000000e+00> : vector<16xf32>
    %10 = vector.multi_reduction <add>, %9, %cst_6 [1] : vector<16x32xf32> to vector<16xf32>
    %11 = vector.shape_cast %10 : vector<16xf32> to vector<16x1xf32>
    %cst_7 = arith.constant 3.200000e+01 : f32
    %12 = vector.broadcast %cst_7 : f32 to vector<16x1xf32>
    %13 = arith.divf %11, %12 : vector<16x1xf32>
    %14 = vector.broadcast %6 : vector<16x1xf32> to vector<16x32xf32>
    %15 = arith.subf %0, %14 : vector<16x32xf32>
    %cst_8 = arith.constant 9.99999974E-6 : f32
    %16 = vector.broadcast %cst_8 : f32 to vector<16x1xf32>
    %17 = arith.addf %13, %16 : vector<16x1xf32>
    %18 = math.rsqrt %17 : vector<16x1xf32>
    %19 = vector.broadcast %18 : vector<16x1xf32> to vector<16x32xf32>
    %20 = arith.mulf %15, %19 : vector<16x32xf32>
    %21 = vector.broadcast %1 : vector<1x32xf32> to vector<16x32xf32>
    %22 = arith.mulf %20, %21 : vector<16x32xf32>
    %23 = vector.broadcast %2 : vector<1x32xf32> to vector<16x32xf32>
    %24 = arith.addf %22, %23 : vector<16x32xf32>
    %25 = arith.truncf %24 : vector<16x32xf32> to vector<16x32xbf16>
    %c0_9 = arith.constant 0 : index
    %c0_10 = arith.constant 0 : index
    %26 = vector.load %arg5[%c0_9, %c0_10] : memref<32x64xbf16, #tpu.memory_space<vmem>>, vector<32x64xbf16>
    %cst_11 = arith.constant dense<0.000000e+00> : vector<16x64xf32>
    %27 = tpu.matmul %25, %26, %cst_11 {dimension_numbers = #tpu.dot_dimension_numbers<[1], [0], [0], [1], [0, 0, 1, 1], [], []>} : vector<16x32xbf16>, vector<32x64xbf16>, vector<16x64xf32> -> vector<16x64xf32>
    %c0_12 = arith.constant 0 : index
    %c0_13 = arith.constant 0 : index
    %28 = vector.load %arg6[%c0_12, %c0_13] : memref<16x64xf32, #tpu.memory_space<vmem>>, vector<16x64xf32>
    tpu.vector_store %arg6[%c0_12, %c0_13], %27 {strides = array<i32>} : memref<16x64xf32, #tpu.memory_space<vmem>>, vector<16x64xf32>,
    return
  }
  func.func @transform_0(%arg0: i32, %arg1: i32) -> (i32, i32) {
    %c0_i32 = arith.constant 0 : i32
    %c0_i32_0 = arith.constant 0 : i32
    return %arg0, %c0_i32 : i32, i32
  }
  func.func @transform_1(%arg0: i32, %arg1: i32) -> (i32, i32) {
    %c0_i32 = arith.constant 0 : i32
    %c0_i32_0 = arith.constant 0 : i32
    %c0_i32_1 = arith.constant 0 : i32
    return %c0_i32, %c0_i32_0 : i32, i32
  }
  func.func @transform_2(%arg0: i32, %arg1: i32) -> (i32, i32) {
    %c0_i32 = arith.constant 0 : i32
    %c0_i32_0 = arith.constant 0 : i32
    %c0_i32_1 = arith.constant 0 : i32
    return %c0_i32, %c0_i32_0 : i32, i32
  }
  func.func @transform_3(%arg0: i32, %arg1: i32) -> (i32, i32) {
    %c0_i32 = arith.constant 0 : i32
    %c0_i32_0 = arith.constant 0 : i32
    return %c0_i32, %arg1 : i32, i32
  }
  func.func @transform_4(%arg0: i32, %arg1: i32) -> (i32, i32) {
    %c0_i32 = arith.constant 0 : i32
    return %arg0, %arg1 : i32, i32
  }
}

module attributes {stable_mosaic.version = 11 : i64} {
  func.func @_layer_kernel(%arg0: i32, %arg1: i32, %arg2: memref<1x8x32xf32, #tpu.memory_space<vmem>>, %arg3: memref<1x32xf32, #tpu.memory_space<vmem>>, %arg4: memref<1x32xf32, #tpu.memory_space<vmem>>, %arg5: memref<32x144xbf16, #tpu.memory_space<vmem>>, %arg6: memref<48x32xbf16, #tpu.memory_space<vmem>>, %arg7: memref<1x32xf32, #tpu.memory_space<vmem>>, %arg8: memref<1x32xf32, #tpu.memory_space<vmem>>, %arg9: memref<32x128xbf16, #tpu.memory_space<vmem>>, %arg10: memref<1x128xf32, #tpu.memory_space<vmem>>, %arg11: memref<128x32xbf16, #tpu.memory_space<vmem>>, %arg12: memref<1x32xf32, #tpu.memory_space<vmem>>, %arg13: memref<1x8x32xf32, #tpu.memory_space<vmem>>, %arg14: memref<1x48xf32, #tpu.memory_space<vmem>>, %arg15: memref<8x48xf32, #tpu.memory_space<vmem>>) attributes {dimension_semantics = [#tpu.dimension_semantics<parallel>, #tpu.dimension_semantics<arbitrary>], iteration_bounds = array<i64: 2, 1>, scalar_prefetch = 0 : i64, scratch_operands = 2 : i64, tpu.core_type = #tpu.core_type<tc>, window_params = [{transform_indices = @transform_0, window_bounds = array<i64: 1, 8, 32>}, {pipeline_mode = #tpu.pipeline_mode<synchronous>, transform_indices = @transform_1, window_bounds = array<i64: 1, 32>}, {pipeline_mode = #tpu.pipeline_mode<synchronous>, transform_indices = @transform_2, window_bounds = array<i64: 1, 32>}, {pipeline_mode = #tpu.pipeline_mode<synchronous>, transform_indices = @transform_3, window_bounds = array<i64: 32, 144>}, {pipeline_mode = #tpu.pipeline_mode<synchronous>, transform_indices = @transform_4, window_bounds = array<i64: 48, 32>}, {pipeline_mode = #tpu.pipeline_mode<synchronous>, transform_indices = @transform_5, window_bounds = array<i64: 1, 32>}, {pipeline_mode = #tpu.pipeline_mode<synchronous>, transform_indices = @transform_6, window_bounds = array<i64: 1, 32>}, {pipeline_mode = #tpu.pipeline_mode<synchronous>, transform_indices = @transform_7, window_bounds = array<i64: 32, 128>}, {pipeline_mode = #tpu.pipeline_mode<synchronous>, transform_indices = @transform_8, window_bounds = array<i64: 1, 128>}, {pipeline_mode = #tpu.pipeline_mode<synchronous>, transform_indices = @transform_9, window_bounds = array<i64: 128, 32>}, {pipeline_mode = #tpu.pipeline_mode<synchronous>, transform_indices = @transform_10, window_bounds = array<i64: 1, 32>}, {transform_indices = @transform_11, window_bounds = array<i64: 1, 8, 32>}]} {
    %c0 = arith.constant 0 : index
    %c0_0 = arith.constant 0 : index
    %c0_1 = arith.constant 0 : index
    %0 = vector.load %arg2[%c0, %c0_0, %c0_1] : memref<1x8x32xf32, #tpu.memory_space<vmem>>, vector<1x8x32xf32>
    %1 = vector.shape_cast %0 : vector<1x8x32xf32> to vector<8x32xf32>
    %c0_2 = arith.constant 0 : index
    %c0_3 = arith.constant 0 : index
    %2 = vector.load %arg3[%c0_2, %c0_3] : memref<1x32xf32, #tpu.memory_space<vmem>>, vector<1x32xf32>
    %c0_4 = arith.constant 0 : index
    %c0_5 = arith.constant 0 : index
    %3 = vector.load %arg4[%c0_4, %c0_5] : memref<1x32xf32, #tpu.memory_space<vmem>>, vector<1x32xf32>
    %cst = arith.constant dense<0.000000e+00> : vector<8xf32>
    %4 = vector.multi_reduction <add>, %1, %cst [1] : vector<8x32xf32> to vector<8xf32>
    %5 = vector.shape_cast %4 : vector<8xf32> to vector<8x1xf32>
    %cst_6 = arith.constant 3.200000e+01 : f32
    %6 = vector.broadcast %cst_6 : f32 to vector<8x1xf32>
    %7 = arith.divf %5, %6 : vector<8x1xf32>
    %8 = vector.broadcast %7 : vector<8x1xf32> to vector<8x32xf32>
    %9 = arith.subf %1, %8 : vector<8x32xf32>
    %10 = arith.mulf %9, %9 : vector<8x32xf32>
    %cst_7 = arith.constant dense<0.000000e+00> : vector<8xf32>
    %11 = vector.multi_reduction <add>, %10, %cst_7 [1] : vector<8x32xf32> to vector<8xf32>
    %12 = vector.shape_cast %11 : vector<8xf32> to vector<8x1xf32>
    %cst_8 = arith.constant 3.200000e+01 : f32
    %13 = vector.broadcast %cst_8 : f32 to vector<8x1xf32>
    %14 = arith.divf %12, %13 : vector<8x1xf32>
    %15 = vector.broadcast %7 : vector<8x1xf32> to vector<8x32xf32>
    %16 = arith.subf %1, %15 : vector<8x32xf32>
    %cst_9 = arith.constant 9.99999974E-6 : f32
    %17 = vector.broadcast %cst_9 : f32 to vector<8x1xf32>
    %18 = arith.addf %14, %17 : vector<8x1xf32>
    %19 = math.rsqrt %18 : vector<8x1xf32>
    %20 = vector.broadcast %19 : vector<8x1xf32> to vector<8x32xf32>
    %21 = arith.mulf %16, %20 : vector<8x32xf32>
    %22 = vector.broadcast %2 : vector<1x32xf32> to vector<8x32xf32>
    %23 = arith.mulf %21, %22 : vector<8x32xf32>
    %24 = vector.broadcast %3 : vector<1x32xf32> to vector<8x32xf32>
    %25 = arith.addf %23, %24 : vector<8x32xf32>
    %c0_10 = arith.constant 0 : index
    %c0_11 = arith.constant 0 : index
    %26 = vector.load %arg5[%c0_10, %c0_11] : memref<32x144xbf16, #tpu.memory_space<vmem>>, vector<32x144xbf16>
    %27 = arith.truncf %25 : vector<8x32xf32> to vector<8x32xbf16>
    %cst_12 = arith.constant dense<0.000000e+00> : vector<8x144xf32>
    %28 = tpu.matmul %27, %26, %cst_12 {dimension_numbers = #tpu.dot_dimension_numbers<[1], [0], [0], [1], [0, 0, 1, 1], [], []>} : vector<8x32xbf16>, vector<32x144xbf16>, vector<8x144xf32> -> vector<8x144xf32>
    %29 = vector.extract_strided_slice %28 {offsets = [0, 0], sizes = [8, 48], strides = [1, 1]} : vector<8x144xf32> to vector<8x48xf32>
    %cst_13 = arith.constant 0.000000e+00 : f32
    %30 = vector.broadcast %cst_13 : f32 to vector<8x48xf32>
    %31 = arith.subf %30, %29 : vector<8x48xf32>
    %32 = math.exp %31 : vector<8x48xf32>
    %cst_14 = arith.constant 1.000000e+00 : f32
    %33 = vector.broadcast %cst_14 : f32 to vector<8x48xf32>
    %34 = arith.addf %33, %32 : vector<8x48xf32>
    %35 = tpu.reciprocal %34 {approx = true} : vector<8x48xf32> -> vector<8x48xf32>
    %36 = vector.extract_strided_slice %28 {offsets = [0, 48], sizes = [8, 48], strides = [1, 1]} : vector<8x144xf32> to vector<8x48xf32>
    %cst_15 = arith.constant 0.000000e+00 : f32
    %37 = vector.broadcast %cst_15 : f32 to vector<8x48xf32>
    %38 = arith.subf %37, %36 : vector<8x48xf32>
    %39 = math.exp %38 : vector<8x48xf32>
    %cst_16 = arith.constant 1.000000e+00 : f32
    %40 = vector.broadcast %cst_16 : f32 to vector<8x48xf32>
    %41 = arith.addf %40, %39 : vector<8x48xf32>
    %42 = tpu.reciprocal %41 {approx = true} : vector<8x48xf32> -> vector<8x48xf32>
    %43 = vector.extract_strided_slice %28 {offsets = [0, 96], sizes = [8, 48], strides = [1, 1]} : vector<8x144xf32> to vector<8x48xf32>
    %cst_17 = arith.constant 9.99999993E-9 : f32
    %44 = vector.broadcast %cst_17 : f32 to vector<8x48xf32>
    %45 = arith.addf %35, %44 : vector<8x48xf32>
    %46 = math.log %45 : vector<8x48xf32>
    %cst_18 = arith.constant 9.99999993E-9 : f32
    %47 = vector.broadcast %cst_18 : f32 to vector<8x48xf32>
    %48 = arith.addf %42, %47 : vector<8x48xf32>
    %49 = math.log %48 : vector<8x48xf32>
    %50 = arith.maximumf %46, %49 : vector<8x48xf32>
    %51 = arith.subf %46, %49 : vector<8x48xf32>
    %52 = math.absf %51 : vector<8x48xf32>
    %cst_19 = arith.constant 0.000000e+00 : f32
    %53 = vector.broadcast %cst_19 : f32 to vector<8x48xf32>
    %54 = arith.subf %53, %52 : vector<8x48xf32>
    %55 = math.exp %54 : vector<8x48xf32>
    %cst_20 = arith.constant 1.000000e+00 : f32
    %56 = vector.broadcast %cst_20 : f32 to vector<8x48xf32>
    %57 = arith.addf %56, %55 : vector<8x48xf32>
    %58 = math.log %57 : vector<8x48xf32>
    %59 = arith.addf %50, %58 : vector<8x48xf32>
    %60 = arith.subf %59, %46 : vector<8x48xf32>
    %61 = arith.subf %59, %49 : vector<8x48xf32>
    %cst_21 = arith.constant -18.420681 : f32
    %62 = vector.broadcast %cst_21 : f32 to vector<8x48xf32>
    %63 = arith.addf %60, %62 : vector<8x48xf32>
    %cst_22 = arith.constant 9.99999993E-9 : f32
    %64 = vector.broadcast %cst_22 : f32 to vector<8x48xf32>
    %65 = arith.addf %43, %64 : vector<8x48xf32>
    %66 = math.log %65 : vector<8x48xf32>
    %67 = arith.addf %61, %66 : vector<8x48xf32>
    %68 = arith.maximumf %63, %67 : vector<8x48xf32>
    %69 = arith.subf %63, %67 : vector<8x48xf32>
    %70 = math.absf %69 : vector<8x48xf32>
    %cst_23 = arith.constant 0.000000e+00 : f32
    %71 = vector.broadcast %cst_23 : f32 to vector<8x48xf32>
    %72 = arith.subf %71, %70 : vector<8x48xf32>
    %73 = math.exp %72 : vector<8x48xf32>
    %cst_24 = arith.constant 1.000000e+00 : f32
    %74 = vector.broadcast %cst_24 : f32 to vector<8x48xf32>
    %75 = arith.addf %74, %73 : vector<8x48xf32>
    %76 = math.log %75 : vector<8x48xf32>
    %77 = arith.addf %68, %76 : vector<8x48xf32>
    %c0_i32 = arith.constant 0 : i32
    %78 = arith.cmpi eq, %arg1, %c0_i32 : i32
    %79 = arith.extui %78 : i1 to i32
    %c0_i32_25 = arith.constant 0 : i32
    %80 = arith.cmpi ne, %79, %c0_i32_25 : i32
    scf.if %80 {
      %cst_90 = arith.constant 0.000000e+00 : f32
      %196 = vector.broadcast %cst_90 : f32 to vector<1x48xf32>
      %c0_91 = arith.constant 0 : index
      %c0_92 = arith.constant 0 : index
      %197 = vector.load %arg14[%c0_91, %c0_92] : memref<1x48xf32, #tpu.memory_space<vmem>>, vector<1x48xf32>
      tpu.vector_store %arg14[%c0_91, %c0_92], %196 {strides = array<i32>} : memref<1x48xf32, #tpu.memory_space<vmem>>, vector<1x48xf32>,
    } else {
    }
    %cst_26 = arith.constant 0.000000e+00 : f32
    %81 = vector.broadcast %cst_26 : f32 to vector<1x48xf32>
    %c0_27 = arith.constant 0 : index
    %c0_28 = arith.constant 0 : index
    %82 = vector.load %arg15[%c0_27, %c0_28] : memref<8x48xf32, #tpu.memory_space<vmem>>, vector<1x48xf32>
    tpu.vector_store %arg15[%c0_27, %c0_28], %81 {strides = array<i32>} : memref<8x48xf32, #tpu.memory_space<vmem>>, vector<1x48xf32>,
    %83 = vector.extract_strided_slice %60 {offsets = [0, 0], sizes = [7, 48], strides = [1, 1]} : vector<8x48xf32> to vector<7x48xf32>
    %c1 = arith.constant 1 : index
    %c0_29 = arith.constant 0 : index
    %84 = vector.load %arg15[%c1, %c0_29] : memref<8x48xf32, #tpu.memory_space<vmem>>, vector<7x48xf32>
    tpu.vector_store %arg15[%c1, %c0_29], %83 {strides = array<i32>} : memref<8x48xf32, #tpu.memory_space<vmem>>, vector<7x48xf32>,
    %c0_30 = arith.constant 0 : index
    %c0_31 = arith.constant 0 : index
    %85 = vector.load %arg15[%c0_30, %c0_31] : memref<8x48xf32, #tpu.memory_space<vmem>>, vector<8x48xf32>
    %86 = arith.addf %60, %85 : vector<8x48xf32>
    %cst_32 = arith.constant 0.000000e+00 : f32
    %87 = vector.broadcast %cst_32 : f32 to vector<2x48xf32>
    %c0_33 = arith.constant 0 : index
    %c0_34 = arith.constant 0 : index
    %88 = vector.load %arg15[%c0_33, %c0_34] : memref<8x48xf32, #tpu.memory_space<vmem>>, vector<2x48xf32>
    tpu.vector_store %arg15[%c0_33, %c0_34], %87 {strides = array<i32>} : memref<8x48xf32, #tpu.memory_space<vmem>>, vector<2x48xf32>,
    %89 = vector.extract_strided_slice %86 {offsets = [0, 0], sizes = [6, 48], strides = [1, 1]} : vector<8x48xf32> to vector<6x48xf32>
    %c2 = arith.constant 2 : index
    %c0_35 = arith.constant 0 : index
    %90 = vector.load %arg15[%c2, %c0_35] : memref<8x48xf32, #tpu.memory_space<vmem>>, vector<6x48xf32>
    tpu.vector_store %arg15[%c2, %c0_35], %89 {strides = array<i32>} : memref<8x48xf32, #tpu.memory_space<vmem>>, vector<6x48xf32>,
    %c0_36 = arith.constant 0 : index
    %c0_37 = arith.constant 0 : index
    %91 = vector.load %arg15[%c0_36, %c0_37] : memref<8x48xf32, #tpu.memory_space<vmem>>, vector<8x48xf32>
    %92 = arith.addf %86, %91 : vector<8x48xf32>
    %cst_38 = arith.constant 0.000000e+00 : f32
    %93 = vector.broadcast %cst_38 : f32 to vector<4x48xf32>
    %c0_39 = arith.constant 0 : index
    %c0_40 = arith.constant 0 : index
    %94 = vector.load %arg15[%c0_39, %c0_40] : memref<8x48xf32, #tpu.memory_space<vmem>>, vector<4x48xf32>
    tpu.vector_store %arg15[%c0_39, %c0_40], %93 {strides = array<i32>} : memref<8x48xf32, #tpu.memory_space<vmem>>, vector<4x48xf32>,
    %95 = vector.extract_strided_slice %92 {offsets = [0, 0], sizes = [4, 48], strides = [1, 1]} : vector<8x48xf32> to vector<4x48xf32>
    %c4 = arith.constant 4 : index
    %c0_41 = arith.constant 0 : index
    %96 = vector.load %arg15[%c4, %c0_41] : memref<8x48xf32, #tpu.memory_space<vmem>>, vector<4x48xf32>
    tpu.vector_store %arg15[%c4, %c0_41], %95 {strides = array<i32>} : memref<8x48xf32, #tpu.memory_space<vmem>>, vector<4x48xf32>,
    %c0_42 = arith.constant 0 : index
    %c0_43 = arith.constant 0 : index
    %97 = vector.load %arg15[%c0_42, %c0_43] : memref<8x48xf32, #tpu.memory_space<vmem>>, vector<8x48xf32>
    %98 = arith.addf %92, %97 : vector<8x48xf32>
    %c0_44 = arith.constant 0 : index
    %c0_45 = arith.constant 0 : index
    %99 = vector.load %arg14[%c0_44, %c0_45] : memref<1x48xf32, #tpu.memory_space<vmem>>, vector<1x48xf32>
    %100 = vector.broadcast %99 : vector<1x48xf32> to vector<8x48xf32>
    %101 = arith.addf %98, %100 : vector<8x48xf32>
    %102 = vector.extract_strided_slice %101 {offsets = [7, 0], sizes = [1, 48], strides = [1, 1]} : vector<8x48xf32> to vector<1x48xf32>
    %c0_46 = arith.constant 0 : index
    %c0_47 = arith.constant 0 : index
    %103 = vector.load %arg14[%c0_46, %c0_47] : memref<1x48xf32, #tpu.memory_space<vmem>>, vector<1x48xf32>
    tpu.vector_store %arg14[%c0_46, %c0_47], %102 {strides = array<i32>} : memref<1x48xf32, #tpu.memory_space<vmem>>, vector<1x48xf32>,
    %104 = arith.addf %101, %77 : vector<8x48xf32>
    %105 = math.exp %104 : vector<8x48xf32>
    %c0_48 = arith.constant 0 : index
    %c0_49 = arith.constant 0 : index
    %106 = vector.load %arg6[%c0_48, %c0_49] : memref<48x32xbf16, #tpu.memory_space<vmem>>, vector<48x32xbf16>
    %107 = arith.truncf %105 : vector<8x48xf32> to vector<8x48xbf16>
    %cst_50 = arith.constant dense<0.000000e+00> : vector<8x32xf32>
    %108 = tpu.matmul %107, %106, %cst_50 {dimension_numbers = #tpu.dot_dimension_numbers<[1], [0], [0], [1], [0, 0, 1, 1], [], []>} : vector<8x48xbf16>, vector<48x32xbf16>, vector<8x32xf32> -> vector<8x32xf32>
    %109 = arith.addf %108, %1 : vector<8x32xf32>
    %c0_51 = arith.constant 0 : index
    %c0_52 = arith.constant 0 : index
    %110 = vector.load %arg7[%c0_51, %c0_52] : memref<1x32xf32, #tpu.memory_space<vmem>>, vector<1x32xf32>
    %c0_53 = arith.constant 0 : index
    %c0_54 = arith.constant 0 : index
    %111 = vector.load %arg8[%c0_53, %c0_54] : memref<1x32xf32, #tpu.memory_space<vmem>>, vector<1x32xf32>
    %cst_55 = arith.constant dense<0.000000e+00> : vector<8xf32>
    %112 = vector.multi_reduction <add>, %109, %cst_55 [1] : vector<8x32xf32> to vector<8xf32>
    %113 = vector.shape_cast %112 : vector<8xf32> to vector<8x1xf32>
    %cst_56 = arith.constant 3.200000e+01 : f32
    %114 = vector.broadcast %cst_56 : f32 to vector<8x1xf32>
    %115 = arith.divf %113, %114 : vector<8x1xf32>
    %116 = vector.broadcast %115 : vector<8x1xf32> to vector<8x32xf32>
    %117 = arith.subf %109, %116 : vector<8x32xf32>
    %118 = arith.mulf %117, %117 : vector<8x32xf32>
    %cst_57 = arith.constant dense<0.000000e+00> : vector<8xf32>
    %119 = vector.multi_reduction <add>, %118, %cst_57 [1] : vector<8x32xf32> to vector<8xf32>
    %120 = vector.shape_cast %119 : vector<8xf32> to vector<8x1xf32>
    %cst_58 = arith.constant 3.200000e+01 : f32
    %121 = vector.broadcast %cst_58 : f32 to vector<8x1xf32>
    %122 = arith.divf %120, %121 : vector<8x1xf32>
    %123 = vector.broadcast %115 : vector<8x1xf32> to vector<8x32xf32>
    %124 = arith.subf %109, %123 : vector<8x32xf32>
    %cst_59 = arith.constant 9.99999974E-6 : f32
    %125 = vector.broadcast %cst_59 : f32 to vector<8x1xf32>
    %126 = arith.addf %122, %125 : vector<8x1xf32>
    %127 = math.rsqrt %126 : vector<8x1xf32>
    %128 = vector.broadcast %127 : vector<8x1xf32> to vector<8x32xf32>
    %129 = arith.mulf %124, %128 : vector<8x32xf32>
    %130 = vector.broadcast %110 : vector<1x32xf32> to vector<8x32xf32>
    %131 = arith.mulf %129, %130 : vector<8x32xf32>
    %132 = vector.broadcast %111 : vector<1x32xf32> to vector<8x32xf32>
    %133 = arith.addf %131, %132 : vector<8x32xf32>
    %c0_60 = arith.constant 0 : index
    %c0_61 = arith.constant 0 : index
    %134 = vector.load %arg9[%c0_60, %c0_61] : memref<32x128xbf16, #tpu.memory_space<vmem>>, vector<32x128xbf16>
    %135 = arith.truncf %133 : vector<8x32xf32> to vector<8x32xbf16>
    %cst_62 = arith.constant dense<0.000000e+00> : vector<8x128xf32>
    %136 = tpu.matmul %135, %134, %cst_62 {dimension_numbers = #tpu.dot_dimension_numbers<[1], [0], [0], [1], [0, 0, 1, 1], [], []>} : vector<8x32xbf16>, vector<32x128xbf16>, vector<8x128xf32> -> vector<8x128xf32>
    %c0_63 = arith.constant 0 : index
    %c0_64 = arith.constant 0 : index
    %137 = vector.load %arg10[%c0_63, %c0_64] : memref<1x128xf32, #tpu.memory_space<vmem>>, vector<1x128xf32>
    %138 = vector.broadcast %137 : vector<1x128xf32> to vector<8x128xf32>
    %139 = arith.addf %136, %138 : vector<8x128xf32>
    %cst_65 = arith.constant 5.000000e-01 : f32
    %140 = vector.broadcast %cst_65 : f32 to vector<8x128xf32>
    %141 = arith.mulf %140, %139 : vector<8x128xf32>
    %cst_66 = arith.constant 0.707106769 : f32
    %142 = vector.broadcast %cst_66 : f32 to vector<8x128xf32>
    %143 = arith.mulf %139, %142 : vector<8x128xf32>
    %cst_67 = arith.constant -4.000000e+00 : f32
    %cst_68 = arith.constant 4.000000e+00 : f32
    %144 = vector.broadcast %cst_67 : f32 to vector<8x128xf32>
    %145 = arith.maximumf %144, %143 : vector<8x128xf32>
    %146 = vector.broadcast %cst_68 : f32 to vector<8x128xf32>
    %147 = arith.minimumf %146, %145 : vector<8x128xf32>
    %148 = arith.mulf %147, %147 : vector<8x128xf32>
    %cst_69 = arith.constant -2.72614237E-10 : f32
    %149 = vector.broadcast %cst_69 : f32 to vector<8x128xf32>
    %150 = arith.mulf %148, %149 : vector<8x128xf32>
    %cst_70 = arith.constant 2.77068146E-8 : f32
    %151 = vector.broadcast %cst_70 : f32 to vector<8x128xf32>
    %152 = arith.addf %150, %151 : vector<8x128xf32>
    %153 = arith.mulf %148, %152 : vector<8x128xf32>
    %cst_71 = arith.constant -2.10102394E-6 : f32
    %154 = vector.broadcast %cst_71 : f32 to vector<8x128xf32>
    %155 = arith.addf %153, %154 : vector<8x128xf32>
    %156 = arith.mulf %148, %155 : vector<8x128xf32>
    %cst_72 = arith.constant -5.69250624E-5 : f32
    %157 = vector.broadcast %cst_72 : f32 to vector<8x128xf32>
    %158 = arith.addf %156, %157 : vector<8x128xf32>
    %159 = arith.mulf %148, %158 : vector<8x128xf32>
    %cst_73 = arith.constant -7.34990637E-4 : f32
    %160 = vector.broadcast %cst_73 : f32 to vector<8x128xf32>
    %161 = arith.addf %159, %160 : vector<8x128xf32>
    %162 = arith.mulf %148, %161 : vector<8x128xf32>
    %cst_74 = arith.constant -2.954600e-03 : f32
    %163 = vector.broadcast %cst_74 : f32 to vector<8x128xf32>
    %164 = arith.addf %162, %163 : vector<8x128xf32>
    %165 = arith.mulf %148, %164 : vector<8x128xf32>
    %cst_75 = arith.constant -0.0160960332 : f32
    %166 = vector.broadcast %cst_75 : f32 to vector<8x128xf32>
    %167 = arith.addf %165, %166 : vector<8x128xf32>
    %cst_76 = arith.constant -1.45660715E-5 : f32
    %168 = vector.broadcast %cst_76 : f32 to vector<8x128xf32>
    %169 = arith.mulf %148, %168 : vector<8x128xf32>
    %cst_77 = arith.constant -2.13374049E-4 : f32
    %170 = vector.broadcast %cst_77 : f32 to vector<8x128xf32>
    %171 = arith.addf %169, %170 : vector<8x128xf32>
    %172 = arith.mulf %148, %171 : vector<8x128xf32>
    %cst_78 = arith.constant -0.00168282702 : f32
    %173 = vector.broadcast %cst_78 : f32 to vector<8x128xf32>
    %174 = arith.addf %172, %173 : vector<8x128xf32>
    %175 = arith.mulf %148, %174 : vector<8x128xf32>
    %cst_79 = arith.constant -0.00737332925 : f32
    %176 = vector.broadcast %cst_79 : f32 to vector<8x128xf32>
    %177 = arith.addf %175, %176 : vector<8x128xf32>
    %178 = arith.mulf %148, %177 : vector<8x128xf32>
    %cst_80 = arith.constant -0.0142647391 : f32
    %179 = vector.broadcast %cst_80 : f32 to vector<8x128xf32>
    %180 = arith.addf %178, %179 : vector<8x128xf32>
    %181 = arith.mulf %147, %167 : vector<8x128xf32>
    %182 = arith.divf %181, %180 : vector<8x128xf32>
    %cst_81 = arith.constant 1.000000e+00 : f32
    %183 = vector.broadcast %cst_81 : f32 to vector<8x128xf32>
    %184 = arith.addf %183, %182 : vector<8x128xf32>
    %185 = arith.mulf %141, %184 : vector<8x128xf32>
    %c0_82 = arith.constant 0 : index
    %c0_83 = arith.constant 0 : index
    %186 = vector.load %arg11[%c0_82, %c0_83] : memref<128x32xbf16, #tpu.memory_space<vmem>>, vector<128x32xbf16>
    %187 = arith.truncf %185 : vector<8x128xf32> to vector<8x128xbf16>
    %cst_84 = arith.constant dense<0.000000e+00> : vector<8x32xf32>
    %188 = tpu.matmul %187, %186, %cst_84 {dimension_numbers = #tpu.dot_dimension_numbers<[1], [0], [0], [1], [0, 0, 1, 1], [], []>} : vector<8x128xbf16>, vector<128x32xbf16>, vector<8x32xf32> -> vector<8x32xf32>
    %c0_85 = arith.constant 0 : index
    %c0_86 = arith.constant 0 : index
    %189 = vector.load %arg12[%c0_85, %c0_86] : memref<1x32xf32, #tpu.memory_space<vmem>>, vector<1x32xf32>
    %190 = vector.broadcast %189 : vector<1x32xf32> to vector<8x32xf32>
    %191 = arith.addf %188, %190 : vector<8x32xf32>
    %192 = arith.addf %191, %109 : vector<8x32xf32>
    %c0_87 = arith.constant 0 : index
    %c0_88 = arith.constant 0 : index
    %c0_89 = arith.constant 0 : index
    %193 = vector.load %arg13[%c0_87, %c0_88, %c0_89] : memref<1x8x32xf32, #tpu.memory_space<vmem>>, vector<1x8x32xf32>
    %194 = vector.shape_cast %193 : vector<1x8x32xf32> to vector<8x32xf32>
    %195 = vector.shape_cast %192 : vector<8x32xf32> to vector<1x8x32xf32>
    tpu.vector_store %arg13[%c0_87, %c0_88, %c0_89], %195 {strides = array<i32>} : memref<1x8x32xf32, #tpu.memory_space<vmem>>, vector<1x8x32xf32>,
    return
  }
  func.func @transform_0(%arg0: i32, %arg1: i32) -> (i32, i32, i32) {
    %c0_i32 = arith.constant 0 : i32
    %c0_i32_0 = arith.constant 0 : i32
    return %arg0, %arg1, %c0_i32 : i32, i32, i32
  }
  func.func @transform_1(%arg0: i32, %arg1: i32) -> (i32, i32) {
    %c0_i32 = arith.constant 0 : i32
    %c0_i32_0 = arith.constant 0 : i32
    %c0_i32_1 = arith.constant 0 : i32
    return %c0_i32, %c0_i32_0 : i32, i32
  }
  func.func @transform_2(%arg0: i32, %arg1: i32) -> (i32, i32) {
    %c0_i32 = arith.constant 0 : i32
    %c0_i32_0 = arith.constant 0 : i32
    %c0_i32_1 = arith.constant 0 : i32
    return %c0_i32, %c0_i32_0 : i32, i32
  }
  func.func @transform_3(%arg0: i32, %arg1: i32) -> (i32, i32) {
    %c0_i32 = arith.constant 0 : i32
    %c0_i32_0 = arith.constant 0 : i32
    %c0_i32_1 = arith.constant 0 : i32
    return %c0_i32, %c0_i32_0 : i32, i32
  }
  func.func @transform_4(%arg0: i32, %arg1: i32) -> (i32, i32) {
    %c0_i32 = arith.constant 0 : i32
    %c0_i32_0 = arith.constant 0 : i32
    %c0_i32_1 = arith.constant 0 : i32
    return %c0_i32, %c0_i32_0 : i32, i32
  }
  func.func @transform_5(%arg0: i32, %arg1: i32) -> (i32, i32) {
    %c0_i32 = arith.constant 0 : i32
    %c0_i32_0 = arith.constant 0 : i32
    %c0_i32_1 = arith.constant 0 : i32
    return %c0_i32, %c0_i32_0 : i32, i32
  }
  func.func @transform_6(%arg0: i32, %arg1: i32) -> (i32, i32) {
    %c0_i32 = arith.constant 0 : i32
    %c0_i32_0 = arith.constant 0 : i32
    %c0_i32_1 = arith.constant 0 : i32
    return %c0_i32, %c0_i32_0 : i32, i32
  }
  func.func @transform_7(%arg0: i32, %arg1: i32) -> (i32, i32) {
    %c0_i32 = arith.constant 0 : i32
    %c0_i32_0 = arith.constant 0 : i32
    %c0_i32_1 = arith.constant 0 : i32
    return %c0_i32, %c0_i32_0 : i32, i32
  }
  func.func @transform_8(%arg0: i32, %arg1: i32) -> (i32, i32) {
    %c0_i32 = arith.constant 0 : i32
    %c0_i32_0 = arith.constant 0 : i32
    %c0_i32_1 = arith.constant 0 : i32
    return %c0_i32, %c0_i32_0 : i32, i32
  }
  func.func @transform_9(%arg0: i32, %arg1: i32) -> (i32, i32) {
    %c0_i32 = arith.constant 0 : i32
    %c0_i32_0 = arith.constant 0 : i32
    %c0_i32_1 = arith.constant 0 : i32
    return %c0_i32, %c0_i32_0 : i32, i32
  }
  func.func @transform_10(%arg0: i32, %arg1: i32) -> (i32, i32) {
    %c0_i32 = arith.constant 0 : i32
    %c0_i32_0 = arith.constant 0 : i32
    %c0_i32_1 = arith.constant 0 : i32
    return %c0_i32, %c0_i32_0 : i32, i32
  }
  func.func @transform_11(%arg0: i32, %arg1: i32) -> (i32, i32, i32) {
    %c0_i32 = arith.constant 0 : i32
    %c0_i32_0 = arith.constant 0 : i32
    return %arg0, %arg1, %c0_i32 : i32, i32, i32
  }
}

</mosaic_0001>

<bundles_post_ra>
// kernel: minlstm_lm_forward.5
= control target key start
LH: loop header
LB: loop body
LE: loop exit
PB: predicated region body
PF: predicated region fallthrough
CT: control target
= control target key end

     0   :  { %vm23_vm0 = vcmask 261120   ;;  %s252_s0 = inlined_call_operand.vmem [shape: f32[16,32], index: 0, kind: input, shape index: {}]   ;;  %s253_s1 = inlined_call_operand.vmem [shape: f32[1,32], index: 1, kind: input, shape index: {}]   ;;  %s254_s2 = inlined_call_operand.vmem [shape: f32[1,32], index: 2, kind: input, shape index: {}]   ;;  %s255_s3 = inlined_call_operand.vmem [shape: bf16[32,64], index: 3, kind: input, shape index: {}]   ;;  %s256_s4 = inlined_call_operand.hbm [shape: f32[16,64], index: 4, kind: output, shape index: {}]  }
   0x1   :  { %v19_v0 = vld [vmem:[%s252_s0] sm:$0xff]  ;;  %v20_v1 = vld [vmem:[%s252_s0 + $0x8] sm:$0xff] }
   0x2   :  { %v24_v2 = vsel %vm23_vm0, %v19_v0, 0.0 }
   0x3   :  { %25 = vadd.xlane.f32.xlu0 %v24_v2 }
   0x4   :  { %9 = vsyncpa [#allocation3], 0  ;;  %v27_v3 = vsel %vm23_vm0, %v20_v1, 0.0  ;;  %v168_v14 = vld [vmem:[%s255_s3 + $0x8] sm:$0xff]   ;;  %v196_v15 = vmov 0.0   ;;  %vm197_vm1 = vmmov 0  }
   0x5   :  { %155 = vmatprep.subr.bf16.mxu0 %v196_v15  ;;  %159 = vmatprep.mubr.msk.bf16.mxu0 %vm197_vm1, %v196_v15  ;;  %v169_v16 = vld [vmem:[%s255_s3] sm:$0xff]   ;;  %vm128_vm2 = vcmask 523264   ;;  %s198_s25 = smov [#allocation2]  }
   0x6   :  { %156 = vmatpush3.bf16.msra.mxu0 %v168_v14  ;;  %v147_v25 = vld [vmem:[%s253_s1] ss:$0 sm:$0xff]  ;;  %s136_s26 = sshll.u32 %s198_s25, 4  ;;  %s137_s26 = int_to_ptr.vmem [resolvable:$true] %s136_s26 }
   0x7   :  { %28 = vadd.xlane.f32.xlu0 %v27_v3  ;;  %157 = vmatprep.subr.bf16.mxu0 %v196_v15  ;;  %v148_v29 = vld [vmem:[%s254_s2] ss:$0 sm:$0xff]  ;;  %s174_s1 = scalar_lea.vmem %s137_s26, 256  ;;  %p179_p1 = scmp.lt.s32.totalorder %s137_s26, %s137_s26 }
   0x8   :  { %p175_p0 = scmp.ne.s32.totalorder %s137_s26, %s174_s1  ;;  %p180_p2 = scmp.lt.s32.totalorder %s174_s1, %s174_s1 }
   0xa   :  { %158 = vmatpush3.bf16.msra.mxu0 %v169_v16  ;;  %p181_p3 = por %p180_p2, %p179_p1 }
   0xc   :  { %p182_p4 = pnand %p181_p3, %p175_p0 }
  0x8c   :  { %v26_v4 = vpop.xlane.xlu0 %25 }
  0x8d   :  { %v31_v5 = vmul.f32 0.03125, %v26_v4 }
  0x8f   :  { %v33_v6 = vsub.f32 %v19_v0, %v31_v5 }
  0x90   :  { %v29_v7 = vpop.xlane.xlu0 %28 }
  0x91   :  { %v32_v8 = vmul.f32 0.03125, %v29_v7  ;;  %v35_v9 = vmul.f32 %v33_v6, %v33_v6 }
  0x93   :  { %v34_v10 = vsub.f32 %v20_v1, %v32_v8  ;;  %v37_v11 = vsel %vm23_vm0, %v35_v9, 0.0 }
  0x94   :  { %38 = vadd.xlane.f32.xlu1 %v37_v11 }
  0x95   :  { %v36_v12 = vmul.f32 %v34_v10, %v34_v10 }
  0x97   :  { %v40_v13 = vsel %vm23_vm0, %v36_v12, 0.0 }
  0x98   :  { %41 = vadd.xlane.f32.xlu1 %v40_v13 }
 0x11d   :  { %v39_v17 = vpop.xlane.xlu1 %38 }
 0x11e   :  { %v43_v18 = vmul.f32 0.03125, %v39_v17 }
 0x120   :  { %v45_v19 = vadd.f32 1e-05, %v43_v18 }
 0x121   :  { %v42_v20 = vpop.xlane.xlu1 %41 }
 0x122   :  { %170 = vrsqrt.f32 %v45_v19  ;;  %v44_v21 = vmul.f32 0.03125, %v42_v20 }
 0x124   :  { %v46_v22 = vadd.f32 1e-05, %v44_v21 }
 0x126   :  { %172 = vrsqrt.f32 %v46_v22 }
 0x12f   :  { %v171_v23 = vpop.eup %170 }
 0x130   :  { %v49_v24 = vmul.f32 %v171_v23, %v33_v6 }
 0x132   :  { %v57_v28 = vmul.f32 %v147_v25, %v49_v24 }
 0x133   :  { %v173_v26 = vpop.eup %172 }
 0x134   :  { %v50_v27 = vmul.f32 %v173_v26, %v34_v10  ;;  %v65_v31 = vadd.f32 %v148_v29, %v57_v28 }
 0x136   :  { %v58_v30 = vmul.f32 %v147_v25, %v50_v27 }
 0x138   :  { %v66_v32 = vadd.f32 %v148_v29, %v58_v30 }
 0x13a   :  { %v67_v33 = vpack.c.bf16 %v66_v32, %v65_v31 }
 0x13c   :  { %160 = vmatmul.mubr.msk.bf16.vlgmr.msra.gmra.mxu0 %vm23_vm0, %v67_v33 }
 0x1fc   :  { %v121_v34 = vpop.f32.mrf.mxu0 }
 0x1fd   :  { %129 = vst.msk [vmem:[#allocation2] sm:$0xff] %vm128_vm2, %v121_v34 }
 0x1fe   :  { %v161_v35 = vpop.f32.mrf.mxu0 }
 0x200   :  { %v124_v36 = vpop.f32.mrf.mxu0 }
 0x201   :  { %130 = vst.msk [vmem:[#allocation2 + $0x8] sm:$0xff] %vm128_vm2, %v124_v36 }
 0x202   :  { %v162_v37 = vpop.f32.mrf.mxu0 }
 0x203   :  { %185 = shalt.err (!%p182_p4)
}
 0x204   :  { %s199_s2 = smov 128   ;;  %s200_s27 = smov 8  }
 0x205   :  { %142 = dma.vmem_to_hbm [thread:$0]  %s137_s26, 256, %s256_s4, [#allocation3], %s199_s2, %s199_s2, %s200_s27  }
 0x206   :  { %194 = dma.done.wait [#allocation3], 256  }
 0x207   :  { %195 = vsyncadd [#allocation3], 4294967040 }
 0x208   :  { %146 = vsyncpa [#allocation3], 1 }

// kernel: minlstm_lm_forward.3
= control target key start
LH: loop header
LB: loop body
LE: loop exit
PB: predicated region body
PF: predicated region fallthrough
CT: control target
= control target key end

     0   :  { %s1238_s17 = smov 0   ;;  %s1240_s18 = smov 0   ;;  %s1388_s0 = inlined_call_operand.vmem [shape: f32[2,8,32], index: 0, kind: input, shape index: {}]   ;;  %s1389_s1 = inlined_call_operand.vmem [shape: f32[1,32], index: 1, kind: input, shape index: {}]   ;;  %s1390_s2 = inlined_call_operand.vmem [shape: f32[1,32], index: 2, kind: input, shape index: {}]   ;;  %s1391_s3 = inlined_call_operand.vmem [shape: bf16[32,144], index: 3, kind: input, shape index: {}]   ;;  %s1392_s4 = inlined_call_operand.vmem [shape: bf16[48,32], index: 4, kind: input, shape index: {}]   ;;  %s1393_s5 = inlined_call_operand.vmem [shape: f32[1,32], index: 5, kind: input, shape index: {}]   ;;  %s1394_s6 = inlined_call_operand.vmem [shape: f32[1,32], index: 6, kind: input, shape index: {}]   ;;  %s1395_s7 = inlined_call_operand.vmem [shape: bf16[32,128], index: 7, kind: input, shape index: {}]   ;;  %s1396_s8 = inlined_call_operand.vmem [shape: f32[1,128], index: 8, kind: input, shape index: {}]   ;;  %s1397_s9 = inlined_call_operand.vmem [shape: bf16[128,32], index: 9, kind: input, shape index: {}]   ;;  %s1398_s10 = inlined_call_operand.vmem [shape: f32[1,32], index: 10, kind: input, shape index: {}]   ;;  %s1399_s11 = inlined_call_operand.vmem [shape: f32[2,8,32], index: 11, kind: output, shape index: {}]  }
   0x1   :  { %s1242_s19 = smov 0  }
   0x2 LB: > { %s33_s20 = sadd.s32 1, %s1167_s18  ;;  %p988_p0 = scmp.ge.s32.totalorder %s1171_s19, 1  ;;  %s1171_s19 = sphi %s1242_s19, %s21_s19   ;;  %s1167_s18 = sphi %s1240_s18, %s1401_s18   ;;  %s1163_s17 = sphi %s1238_s17, %s1400_s17  }
   0x3   : > { %p35_p1 = scmp.ge.s32.totalorder %s33_s20, 2  ;;  %p355_p2 = scmp.lt.s32.totalorder %s1171_s19, 3 }
   0x5   : > { %s1403_s20 = smov (%p35_p1, %s33_s20), 0  ;;  %p356_p3 = pnand %p988_p0, %p355_p2 }
   0x6   : > { %p399_p4 = scmp.lt.s32.totalorder (!%p356_p3), %s1163_s17, 1  ;;  %s1175_s23 = smov (!%p356_p3), 32  }
   0x7   : > { %359 = sbr.rel (%p356_p3) target bundleno = 1737 (0x6c9), region = 64 }
   0xc   : > { %s1405_s17 = smov (!%p399_p4, %s1163_s17), 1  ;;  %vm417_vm0 = vcmask 261120   ;;  %v1104_v7 = vld [vmem:[%s1391_s3 + $0x14] ss:$8 sps:$4 sm:$0xff]   ;;  %v1106_v8 = vld [vmem:[%s1391_s3 + $0x10] ss:$8 sps:$4 sm:$0xff]  }
   0xd   : > { %s989_s21 = sshll.u32 %s1405_s17, 3  ;;  %v1107_v9 = vld [vmem:[%s1391_s3 + $0x4] ss:$8 sps:$4 sm:$0xff]   ;;  %486 = vmatprep.subr.bf16.mxu0 %v1104_v7  ;;  %v1173_v10 = vmov 0   ;;  %v1109_v11 = vld [vmem:[%s1391_s3] ss:$8 sps:$4 sm:$0xff]  }
   0xe   : > { %s405_s24 = scalar_lea.vmem %s1388_s0, %s989_s21  ;;  %506 = vmatprep.mubr.bf16.mxu0 %v1173_v10  ;;  %487 = vmatpush1.bf16.msra.mxu0 %v1106_v8  ;;  %v991_v16 = vld [vmem:[%s1389_s1] ss:$0 sm:$0xff]  ;;  %vm569_vm1 = vcmask 385024   ;;  %v1174_v29 = vmov 0.0   ;;  %v1110_v41 = vld [vmem:[%s1392_s4 + $0x10] sm:$0xff]   ;;  %vm1177_vm2 = vmmov 0   ;;  %s412_s14 = scalar_lea.vmem %s1399_s11, %s989_s21 }
   0xf   : > { %v1264_v0 = vld [vmem:[%s405_s24] sm:$0xff]  ;;  %488 = vmatprep.subr.bf16.mxu0 %v1107_v9  ;;  %572 = vst.msk [vmem:[#allocation3] sm:$0x1] %vm569_vm1, %v1174_v29  ;;  %570 = vst.msk [vmem:[#allocation2] sm:$0x1] %vm569_vm1, %v1174_v29  ;;  %1055 = vmatprep.subr.bf16.mxu1 %v1174_v29  ;;  %s1176_s24 = smov 80  }
  0x10   : > { %v418_v1 = vsel %vm417_vm0, %v1264_v0, 0.0  ;;  %v992_v18 = vld [vmem:[%s1390_s2] ss:$0 sm:$0xff]  ;;  %1071 = vmatprep.mubr.msk.bf16.mxu1 %vm1177_vm2, %v1174_v29  ;;  %v1111_v42 = vld [vmem:[%s1392_s4 + $0x8] sm:$0xff]   ;;  %vm573_vm3 = vcmask 391168   ;;  %vm577_vm4 = vcmask 386048  }
  0x11   : > { %419 = vadd.xlane.f32.xlu0 %v418_v1  ;;  %v1112_v43 = vld [vmem:[%s1392_s4] sm:$0xff]   ;;  %vm579_vm5 = vcmask 390144   ;;  %vm583_vm6 = vcmask 388096   ;;  %vm596_vm7 = vcmask 392199   ;;  %vm626_vm8 = vcmask 392192  }
  0x12   : > { %489 = vmatpush1.bf16.msra.mxu0 %v1109_v11 }
  0x13   : > { %1037 = vmatprep.subr.bf16.mxu0 %v1174_v29 }
  0x16   : > { %v998_v10 = vld [vmem:[#allocation2] ss:$0 sm:$0xff] }
  0x9a   : > { %v420_v2 = vpop.xlane.xlu0 %419 }
  0x9b   : > { %v422_v3 = vmul.f32 0.03125, %v420_v2 }
  0x9d   : > { %v423_v4 = vsub.f32 %v1264_v0, %v422_v3 }
  0x9f   : > { %v424_v5 = vmul.f32 %v423_v4, %v423_v4 }
  0xa1   : > { %v425_v6 = vsel %vm417_vm0, %v424_v5, 0.0 }
  0xa2   : > { %426 = vadd.xlane.f32.xlu0 %v425_v6 }
 0x12b   : > { %v427_v12 = vpop.xlane.xlu0 %426 }
 0x12c   : > { %v428_v13 = vmul.f32 0.03125, %v427_v12 }
 0x12e   : > { %v429_v14 = vadd.f32 1e-05, %v428_v13 }
 0x130   : > { %1123 = vrsqrt.f32 %v429_v14 }
 0x13d   : > { %v1124_v15 = vpop.eup %1123 }
 0x13e   : > { %v431_v17 = vmul.f32 %v1124_v15, %v423_v4 }
 0x140   : > { %v438_v19 = vmul.f32 %v991_v16, %v431_v17 }
 0x142   : > { %v445_v20 = vadd.f32 %v992_v18, %v438_v19 }
 0x144   : > { %v450_v21 = vpack.c.bf16 %v445_v20, %v445_v20 }
 0x146   : > { %997 = vmatmul.mubr.msk.bf16.vlgmr.msra.gmra.mxu0 %vm417_vm0, %v450_v21 }
 0x147   : > { %1043 = vmatprep.mubr.msk.bf16.mxu0 %vm1177_vm2, %v1174_v29  ;;  %1038 = vmatpush3.bf16.msra.mxu0 %v1110_v41 }
 0x148   : > { %1039 = vmatprep.subr.bf16.mxu0 %v1174_v29 }
 0x14b   : > { %1040 = vmatpush3.bf16.msra.mxu0 %v1111_v42 }
 0x14c   : > { %1041 = vmatprep.subr.bf16.mxu0 %v1174_v29 }
 0x14f   : > { %1042 = vmatpush3.bf16.msra.mxu0 %v1112_v43 }
 0x150   : > { %1047 = vmatprep.subr.bf16.mxu0 %v1174_v29 }
 0x206   : > { %v508_v22 = vpop.f32.mrf.mxu0 }
 0x207   : > { %v515_v23 = vsub.f32 0.0, %v508_v22  ;;  %v540_v36 = vadd.f32 1e-08, %v508_v22 }
 0x208   : > { %v510_v24 = vpop.f32.mrf.mxu0 }
 0x209   : > { %v516_v25 = vmul.f32 1.442695, %v515_v23  ;;  %v541_v26 = vadd.f32 1e-08, %v510_v24 }
 0x20a   : > { %v512_v27 = vpop.f32.mrf.mxu0 }
 0x20b   : > { %1125 = vpow2.f32 %v516_v25 }
 0x20c   : > { %1127 = vlog2.f32 %v541_v26  ;;  %v513_v28 = vpop.f32.mrf.mxu0 }
 0x218   : > { %v1126_v30 = vpop.eup %1125 }
 0x219   : > { %v1128_v31 = vpop.eup %1127  ;;  %v518_v32 = vadd.f32 1.0, %v1126_v30 }
 0x21a   : > { %v545_v33 = vmul.f32 0.6931472, %v1128_v31 }
 0x21b   : > { %1129 = vrcp.f32 %v518_v32 }
 0x21c   : > { %550 = vrot.lane.b32.xlu0 %v545_v33, %s1175_s23  ;;  %v1114_v33 = vld [vmem:[%s1395_s7] sm:$0xff]  }
 0x228   : > { %v1130_v34 = vpop.eup %1129 }
 0x229   : > { %v520_v35 = vadd.f32 1e-08, %v1130_v34 }
 0x22b   : > { %1131 = vlog2.f32 %v520_v35 }
 0x22c   : > { %1133 = vlog2.f32 %v540_v36 }
 0x238   : > { %v1132_v37 = vpop.eup %1131 }
 0x239   : > { %v522_v38 = vmul.f32 0.6931472, %v1132_v37  ;;  %v1134_v39 = vpop.eup %1133 }
 0x23a   : > { %v543_v40 = vmul.f32 0.6931472, %v1134_v39 }
 0x23b   : > { %524 = vrot.lane.b32.xlu1 %v522_v38, %s1176_s24 }
 0x23f   : > { %548 = vrot.lane.b32.xlu1 %v543_v40, %s1175_s23  ;;  %v1004_v40 = vld [vmem:[%s1394_s6] ss:$0 sm:$0xff] }
 0x28e   : > { %v551_v56 = vpop.permute.xlu0 %550 }
 0x2ad   : > { %v525_v44 = vpop.permute.xlu1 %524 }
 0x2ae   : > { %v528_v45 = vsub.f32 %v522_v38, %v525_v44  ;;  %v527_v52 = vmax.f32 %v522_v38, %v525_v44 }
 0x2b0   : > { %v529_v46 = vand.u32 2147483647, %v528_v45  ;;  %v1116_v45 = vld [vmem:[%s1397_s9 + $0x30] sm:$0xff]  }
 0x2b1   : > { %v549_v55 = vpop.permute.xlu1 %548 }
 0x2b2   : > { %v530_v47 = vsub.f32 0.0, %v529_v46  ;;  %v552_v59 = vsel %vm417_vm0, %v549_v55, %v551_v56  ;;  %v1117_v46 = vld [vmem:[%s1397_s9 + $0x28] sm:$0xff]  }
 0x2b4   : > { %v531_v48 = vmul.f32 1.442695, %v530_v47  ;;  %v1118_v47 = vld [vmem:[%s1397_s9 + $0x20] sm:$0xff]  }
 0x2b6   : > { %1135 = vpow2.f32 %v531_v48  ;;  %v1119_v48 = vld [vmem:[%s1397_s9 + $0x18] sm:$0xff]  }
 0x2c3   : > { %v1136_v49 = vpop.eup %1135 }
 0x2c4   : > { %v533_v50 = vadd.f32 1.0, %v1136_v49  ;;  %v1120_v49 = vld [vmem:[%s1397_s9 + $0x10] sm:$0xff]  }
 0x2c6   : > { %1137 = vlog2.f32 %v533_v50  ;;  %v1121_v50 = vld [vmem:[%s1397_s9 + $0x8] sm:$0xff]  }
 0x2d3   : > { %v1138_v51 = vpop.eup %1137 }
 0x2d4   : > { %v535_v53 = vmul.f32 0.6931472, %v1138_v51  ;;  %v1122_v51 = vld [vmem:[%s1397_s9] sm:$0xff]  }
 0x2d6   : > { %v536_v54 = vadd.f32 %v535_v53, %v527_v52  ;;  %v1005_v52 = vld [vmem:[%s1396_s8] ss:$0 sm:$0xff] }
 0x2d8   : > { %v537_v57 = vsub.f32 %v536_v54, %v522_v38  ;;  %v538_v58 = vsub.f32 %v536_v54, %v525_v44  ;;  %v1003_v38 = vld [vmem:[%s1393_s5] ss:$0 sm:$0xff]  ;;  %v1115_v44 = vld [vmem:[%s1397_s9 + $0x38] sm:$0xff]  }
 0x2d9   : > { %1056 = vmatpush3.bf16.msra.mxu1 %v1115_v44 }
 0x2da   : > { %574 = vst.msk [vmem:[#allocation3 + $0x1] sm:$0x7f] %vm573_vm3, %v537_v57  ;;  %v539_v60 = vadd.f32 -18.420681, %v537_v57  ;;  %v554_v61 = vadd.f32 %v552_v59, %v538_v58  ;;  %1057 = vmatprep.subr.bf16.mxu1 %v1174_v29 }
 0x2dc   : > { %v556_v62 = vsub.f32 %v539_v60, %v554_v61  ;;  %v555_v14 = vmax.f32 %v539_v60, %v554_v61 }
 0x2dd   : > { %1058 = vmatpush3.bf16.msra.mxu1 %v1116_v45 }
 0x2de   : > { %v557_v63 = vand.u32 2147483647, %v556_v62  ;;  %1059 = vmatprep.subr.bf16.mxu1 %v1174_v29 }
 0x2e0   : > { %v558_v1 = vsub.f32 0.0, %v557_v63 }
 0x2e1   : > { %v575_v2 = vld [vmem:[#allocation3] sm:$0xff]  ;;  %1060 = vmatpush3.bf16.msra.mxu1 %v1117_v46 }
 0x2e2   : > { %v576_v3 = vadd.f32 %v575_v2, %v537_v57  ;;  %578 = vst.msk [vmem:[#allocation3] sm:$0x3] %vm577_vm4, %v1174_v29  ;;  %v559_v4 = vmul.f32 1.442695, %v558_v1  ;;  %1061 = vmatprep.subr.bf16.mxu1 %v1174_v29 }
 0x2e4   : > { %580 = vst.msk [vmem:[#allocation3 + $0x2] sm:$0x3f] %vm579_vm5, %v576_v3  ;;  %1139 = vpow2.f32 %v559_v4 }
 0x2e5   : > { %1062 = vmatpush3.bf16.msra.mxu1 %v1118_v47 }
 0x2e6   : > { %1063 = vmatprep.subr.bf16.mxu1 %v1174_v29 }
 0x2e9   : > { %1064 = vmatpush3.bf16.msra.mxu1 %v1119_v48 }
 0x2ea   : > { %1065 = vmatprep.subr.bf16.mxu1 %v1174_v29 }
 0x2eb   : > { %v581_v5 = vld [vmem:[#allocation3] sm:$0xff] }
 0x2ec   : > { %v582_v6 = vadd.f32 %v581_v5, %v576_v3  ;;  %584 = vst.msk [vmem:[#allocation3] sm:$0xf] %vm583_vm6, %v1174_v29 }
 0x2ed   : > { %1066 = vmatpush3.bf16.msra.mxu1 %v1120_v49 }
 0x2ee   : > { %585 = vst.msk [vmem:[#allocation3 + $0x4] sm:$0xf] %vm583_vm6, %v582_v6  ;;  %1067 = vmatprep.subr.bf16.mxu1 %v1174_v29 }
 0x2f1   : > { %v1140_v7 = vpop.eup %1139  ;;  %1068 = vmatpush3.bf16.msra.mxu1 %v1121_v50 }
 0x2f2   : > { %v561_v8 = vadd.f32 1.0, %v1140_v7  ;;  %1069 = vmatprep.subr.bf16.mxu1 %v1174_v29 }
 0x2f4   : > { %1141 = vlog2.f32 %v561_v8 }
 0x2f5   : > { %v586_v9 = vld [vmem:[#allocation3] sm:$0xff]  ;;  %1070 = vmatpush3.bf16.msra.mxu1 %v1122_v51 }
 0x2f6   : > { %v587_v11 = vadd.f32 %v586_v9, %v582_v6 }
 0x2f8   : > { %v595_v12 = vadd.f32 %v998_v10, %v587_v11 }
 0x2fa   : > { %597 = vst.msk [vmem:[#allocation2 - $0x7] sm:$0x80] %vm596_vm7, %v595_v12 }
 0x301   : > { %v1142_v13 = vpop.eup %1141 }
 0x302   : > { %v563_v15 = vmul.f32 0.6931472, %v1142_v13 }
 0x304   : > { %v564_v16 = vadd.f32 %v563_v15, %v555_v14 }
 0x306   : > { %v598_v17 = vadd.f32 %v595_v12, %v564_v16 }
 0x308   : > { %v599_v18 = vmul.f32 1.442695, %v598_v17 }
 0x30a   : > { %1143 = vpow2.f32 %v599_v18 }
 0x317   : > { %v1144_v19 = vpop.eup %1143 }
 0x318   : > { %v607_v20 = vpack.c.bf16 %v1144_v19, %v1144_v19 }
 0x31a   : > { %1044 = vmatmul.mubr.msk.bf16.vlgmr.msra.gmra.mxu0 %vm626_vm8, %v607_v20 }
 0x31b   : > { %1051 = vmatprep.mubr.msk.bf16.mxu0 %vm1177_vm2, %v1174_v29 }
 0x3da   : > { %v664_v21 = vpop.f32.mrf.mxu0 }
 0x3db   : > { %v1315_v22 = vadd.f32 %v664_v21, %v1264_v0  ;;  %v1113_v0 = vld [vmem:[%s1395_s7 + $0x8] sm:$0xff]  }
 0x3dc   : > { %v1045_v23 = vpop.f32.mrf.mxu0  ;;  %1048 = vmatpush3.bf16.msra.mxu0 %v1113_v0 }
 0x3dd   : > { %v672_v24 = vsel %vm417_vm0, %v1315_v22, 0.0  ;;  %1049 = vmatprep.subr.bf16.mxu0 %v1174_v29 }
 0x3de   : > { %673 = vadd.xlane.f32.xlu1 %v672_v24  ;;  %v667_v25 = vpop.f32.mrf.mxu0 }
 0x3df   : > { %v1010_v25 = vld [vmem:[%s1398_s10] ss:$0 sm:$0xff] }
 0x3e0   : > { %v1046_v26 = vpop.f32.mrf.mxu0  ;;  %1050 = vmatpush3.bf16.msra.mxu0 %v1114_v33 }
 0x467   : > { %v674_v27 = vpop.xlane.xlu1 %673 }
 0x468   : > { %v675_v28 = vmul.f32 0.03125, %v674_v27 }
 0x46a   : > { %v676_v30 = vsub.f32 %v1315_v22, %v675_v28 }
 0x46c   : > { %v677_v31 = vmul.f32 %v676_v30, %v676_v30 }
 0x46e   : > { %v678_v32 = vsel %vm417_vm0, %v677_v31, 0.0 }
 0x46f   : > { %679 = vadd.xlane.f32.xlu0 %v678_v32 }
 0x4f8   : > { %v680_v34 = vpop.xlane.xlu0 %679 }
 0x4f9   : > { %v681_v35 = vmul.f32 0.03125, %v680_v34 }
 0x4fb   : > { %v682_v36 = vadd.f32 1e-05, %v681_v35 }
 0x4fd   : > { %1145 = vrsqrt.f32 %v682_v36 }
 0x50a   : > { %v1146_v37 = vpop.eup %1145 }
 0x50b   : > { %v684_v39 = vmul.f32 %v1146_v37, %v676_v30 }
 0x50d   : > { %v691_v41 = vmul.f32 %v1003_v38, %v684_v39 }
 0x50f   : > { %v698_v42 = vadd.f32 %v1004_v40, %v691_v41 }
 0x511   : > { %v703_v43 = vpack.c.bf16 %v698_v42, %v698_v42 }
 0x513   : > { %1052 = vmatmul.mubr.msk.bf16.vlgmr.msra.gmra.mxu0 %vm417_vm0, %v703_v43 }
 0x5d3   : > { %v760_v53 = vpop.f32.mrf.mxu0 }
 0x5d4   : > { %v761_v54 = vadd.f32 %v1005_v52, %v760_v53 }
 0x5d5   : > { %v1053_v55 = vpop.f32.mrf.mxu0 }
 0x5d6   : > { %v767_v56 = vmul.f32 0.70710677, %v761_v54  ;;  %v766_v20 = vmul.f32 0.5, %v761_v54 }
 0x5d7   : > { %v763_v57 = vpop.f32.mrf.mxu0 }
 0x5d8   : > { %v1009_v58 = vclamps-f32 %v767_v56, 4.0 }
 0x5d9   : > { %v1054_v59 = vpop.f32.mrf.mxu0 }
 0x5da   : > { %v770_v60 = vmul.f32 %v1009_v58, %v1009_v58 }
 0x5dc   : > { %v771_v61 = vmul.f32 -2.7261424e-10, %v770_v60  ;;  %v783_v62 = vmul.f32 -1.45660715e-05, %v770_v60 }
 0x5de   : > { %v772_v63 = vadd.f32 2.7706815e-08, %v771_v61  ;;  %v784_v1 = vadd.f32 -0.00021337405, %v783_v62 }
 0x5e0   : > { %v773_v2 = vmul.f32 %v772_v63, %v770_v60  ;;  %v785_v3 = vmul.f32 %v784_v1, %v770_v60 }
 0x5e2   : > { %v774_v29 = vadd.f32 -2.101024e-06, %v773_v2  ;;  %v786_v4 = vadd.f32 -0.001682827, %v785_v3 }
 0x5e4   : > { %v775_v5 = vmul.f32 %v774_v29, %v770_v60  ;;  %v787_v6 = vmul.f32 %v786_v4, %v770_v60 }
 0x5e6   : > { %v776_v7 = vadd.f32 -5.6925062e-05, %v775_v5  ;;  %v788_v8 = vadd.f32 -0.0073733293, %v787_v6 }
 0x5e8   : > { %v777_v9 = vmul.f32 %v776_v7, %v770_v60  ;;  %v789_v10 = vmul.f32 %v788_v8, %v770_v60 }
 0x5ea   : > { %v778_v11 = vadd.f32 -0.00073499064, %v777_v9  ;;  %v790_v12 = vadd.f32 -0.014264739, %v789_v10 }
 0x5ec   : > { %v779_v13 = vmul.f32 %v778_v11, %v770_v60  ;;  %1147 = vrcp.f32 %v790_v12 }
 0x5ee   : > { %v780_v14 = vadd.f32 -0.0029546, %v779_v13 }
 0x5f0   : > { %v781_v15 = vmul.f32 %v780_v14, %v770_v60 }
 0x5f2   : > { %v782_v16 = vadd.f32 -0.016096033, %v781_v15 }
 0x5f4   : > { %v791_v17 = vmul.f32 %v1009_v58, %v782_v16 }
 0x5f9   : > { %v1148_v18 = vpop.eup %1147 }
 0x5fa   : > { %v793_v19 = vmul.f32 %v1148_v18, %v791_v17 }
 0x5fc   : > { %v794_v21 = vadd.f32 1.0, %v793_v19 }
 0x5fe   : > { %v795_v23 = vmul.f32 %v794_v21, %v766_v20 }
 0x600   : > { %v812_v24 = vpack.c.bf16 %v795_v23, %v795_v23 }
 0x602   : > { %1072 = vmatmul.mubr.bf16.vlgmr.msra.gmra.mxu1 %v812_v24 }
 0x6c2   : > { %v902_v26 = vpop.f32.mrf.mxu1 }
 0x6c3   : > { %v903_v27 = vadd.f32 %v1010_v25, %v902_v26 }
 0x6c4   : > { %v1073_v28 = vpop.f32.mrf.mxu1 }
 0x6c5   : > { %v908_v30 = vadd.f32 %v903_v27, %v1315_v22 }
 0x6c6   : > { %v905_v31 = vpop.f32.mrf.mxu1 }
 0x6c7   : > { %909 = vst.msk [vmem:[%s412_s14] sm:$0xff] %vm417_vm0, %v908_v30 }
 0x6c8   : > { %v1074_v32 = vpop.f32.mrf.mxu1 }
 0x6c9 PF: > { %s21_s19 = sadd.s32 1, %s1171_s19   ;;  %s1400_s17 = smov %s1167_s18 }
 0x6ca   : > { %p18_p5 = scmp.ge.s32.totalorder %s21_s19, 4   ;;  %s1401_s18 = smov %s1403_s20 }
 0x6cc   :  { %20 = sbr.rel (!%p18_p5) target bundleno = 2 (0x2), region = 98 }

</bundles_post_ra>
